<compile_context>
chip_gen: v7x
topology: tpu7x:2x2x1
jax: 0.10.0
libtpu: 0.0.40
codegen_flags: <defaults>
</compile_context>

<pallas_src>
import math

import jax
import jax.numpy as jnp
from jax.experimental import pallas as pl
from jax.experimental.pallas import tpu as pltpu


def _mlp_kernel(x_ref, *refs):
    """Fused MLP over one batch tile.

    x_ref:  [tile_n, in_dim]   natural layout block (bf16/f32).
    refs = (w0, b0, w1, b1, ..., w_last_T, b_last_row, out_ref)
      hidden layers i < n-1 : w_i [out_i, in_i] (bf16), b_i [out_i, 1] (f32)
      output layer          : w^T  [h_last, out] (bf16), b [1, out] (f32)
    out_ref: [tile_n, out_dim] natural layout block.
    Intermediates are kept lane-dense [features, tile_n]; all post-matmul
    elementwise math (bias, ReLU, tanh) runs in f32.
    """
    out_ref = refs[-1]
    wb = refs[:-1]
    n = len(wb) // 2  # number of linear layers

    if n == 1:
        # Degenerate single-linear module: x [tile_n,in] @ wT [in,out] -> tanh.
        w_ref, b_ref = wb[0], wb[1]
        acc = jax.lax.dot_general(
            x_ref[...].astype(w_ref.dtype), w_ref[...],
            (((1,), (0,)), ((), ())), preferred_element_type=jnp.float32)
        out_ref[...] = jnp.tanh(acc + b_ref[...]).astype(out_ref.dtype)
        return

    # Layer 0: [h0, in] x [tile_n, in] -> [h0, tile_n]  (standard "Linear"
    # contraction; batch ends up on the 128 lanes with no HBM transpose).
    w0_ref, b0_ref = wb[0], wb[1]
    h = jax.lax.dot_general(
        w0_ref[...], x_ref[...].astype(w0_ref.dtype),
        (((1,), (1,)), ((), ())), preferred_element_type=jnp.float32)
    h = jnp.maximum(h + b0_ref[...], 0.0).astype(w0_ref.dtype)

    # Hidden layers: plain [out_i, in_i] x [in_i, tile_n]; lane-dense bias/ReLU.
    for i in range(1, n - 1):
        w_ref, b_ref = wb[2 * i], wb[2 * i + 1]
        acc = jnp.dot(w_ref[...], h, preferred_element_type=jnp.float32)
        h = jnp.maximum(acc + b_ref[...], 0.0).astype(w_ref.dtype)

    # Output layer: contract h's feature dim (lhs dim 0) against the
    # pre-transposed weight [h_last, out] -> [tile_n, out], so the block is
    # stored directly in the natural layout (no wrapper-side HBM transpose).
    wT_ref, bT_ref = wb[2 * (n - 1)], wb[2 * (n - 1) + 1]
    acc = jax.lax.dot_general(
        h, wT_ref[...], (((0,), (0,)), ((), ())),
        preferred_element_type=jnp.float32)
    out_ref[...] = jnp.tanh(acc + bT_ref[...]).astype(out_ref.dtype)


def _pick_tile_n(n):
    """Batch-tile size: aim for >=8 grid blocks (>=4 per TC on dual-TC v7x so
    the input DMA pipelines); round to a multiple of 128 for lane-dense
    intermediates; cap at 2048 rows (amortizes ~0.35us/step overhead)."""
    t = -(-n // 8)                          # ~8 blocks
    t = ((t + 127) // 128) * 128            # lane-dense intermediates
    t = max(128, min(t, 2048))
    return min(t, ((n + 7) // 8) * 8)       # never (much) bigger than the batch


def mlp_forward(x, params, *, tile_n=None, out_dtype=jnp.bfloat16):
    """x: [N, in_dim]; params: list of (W [out, in], b [out, 1] or [out]).

    Returns [N, out_dim] in `out_dtype`. No wrapper-side transposes/pads/slices
    — the only HBM traffic is the kernel's own input read and output write.
    """
    N, in_dim = x.shape
    n_layers = len(params)
    out_dim = params[-1][0].shape[0]

    if tile_n is None:
        tile_n = _pick_tile_n(N)
    assert tile_n > 0 and tile_n % 8 == 0, tile_n
    n_tiles = pl.cdiv(N, tile_n)            # ragged last block handled by Pallas

    # Flatten params. Hidden layers keep the PyTorch [out, in] layout; the
    # output layer's (tiny) weight is pre-transposed and its bias reshaped to a
    # row so the kernel can emit natural [tile_n, out] blocks.
    flat = []
    in_specs = [pl.BlockSpec((tile_n, in_dim), lambda i: (i, 0))]
    for li, (w, b) in enumerate(params):
        b = jnp.asarray(b).astype(jnp.float32).reshape(-1)
        if li == n_layers - 1:
            w = w.T                          # [h_last, out]  (tiny, host-side)
            b = b.reshape(1, -1)             # broadcast over batch rows
        else:
            b = b.reshape(-1, 1)             # broadcast over batch lanes
        flat += [w, b]
        # Tiny params stay resident every grid step (constant index_map).
        in_specs.append(pl.BlockSpec(w.shape, lambda i: (0, 0)))
        in_specs.append(pl.BlockSpec(b.shape, lambda i: (0, 0)))

    out_spec = pl.BlockSpec((tile_n, out_dim), lambda i: (i, 0))

    # VMEM budget: double-buffered I/O blocks + resident params + f32 activation
    # slack; capped at half of physical VMEM (v7x has only 64 MiB).
    out_itemsize = jnp.dtype(out_dtype).itemsize
    param_bytes = sum(p.size * p.dtype.itemsize for p in flat)
    max_feat = max(max(w.shape) for w, _ in params)
    est = (2 * tile_n * (in_dim * x.dtype.itemsize + out_dim * out_itemsize)
           + 2 * param_bytes
           + 4 * max_feat * tile_n * 4)
    try:
        vmem_cap = int(pltpu.get_tpu_info().vmem_capacity_bytes) // 2
    except Exception:
        vmem_cap = 32 << 20
    vmem_limit = int(min(max(2 * est, 8 << 20), vmem_cap))

    return pl.pallas_call(
        _mlp_kernel,
        out_shape=jax.ShapeDtypeStruct((N, out_dim), out_dtype),
        grid_spec=pltpu.PrefetchScalarGridSpec(
            num_scalar_prefetch=0,
            grid=(n_tiles,),
            in_specs=in_specs,
            out_specs=out_spec,
        ),
        compiler_params=pltpu.CompilerParams(
            dimension_semantics=("parallel",),
            vmem_limit_bytes=vmem_limit),
    )(x, *flat)


def init_mlp_params(key, input_size, hidden_size, output_size,
                    w_dtype=jnp.bfloat16, b_dtype=jnp.float32):
    """torch.nn.Linear-style init: U(-k, k), k = 1/sqrt(fan_in).
    Weights stored [out, in] (PyTorch layout), bf16; biases f32 [out, 1]."""
    dims = [input_size] + list(hidden_size) + [output_size]
    params = []
    for fan_in, fan_out in zip(dims[:-1], dims[1:]):
        key, kw, kb = jax.random.split(key, 3)
        k = 1.0 / math.sqrt(fan_in)
        w = jax.random.uniform(kw, (fan_out, fan_in), jnp.float32, -k, k).astype(w_dtype)
        b = jax.random.uniform(kb, (fan_out, 1), jnp.float32, -k, k).astype(b_dtype)
        params.append((w, b))
    return params


def mlp_reference(x, params):
    """Pure-JAX reference mirroring the kernel's mixed precision
    (bf16 weights / hidden activations, f32 accumulate + bias + nonlinearity)."""
    h = x
    n = len(params)
    for i, (w, b) in enumerate(params):
        acc = (jnp.dot(h.astype(jnp.float32), w.astype(jnp.float32).T)
               + b.astype(jnp.float32).reshape(-1))
        if i == n - 1:
            h = jnp.tanh(acc)
        else:
            h = jnp.maximum(acc, 0.0).astype(w.dtype)   # kernel keeps hidden bf16
    return h


if __name__ == "__main__":
    # Module config (dropout = 0.0 default).
    input_size = 16
    hidden_size = [32, 32]
    output_size = 8

    key = jax.random.PRNGKey(0)
    key, kx = jax.random.split(key)
    params = init_mlp_params(key, input_size, hidden_size, output_size)

    # Exact-multiple batch and a ragged batch (exercises the partial last block).
    for batch in (512, 530):
        x = jax.random.normal(kx, (batch, input_size), jnp.float32).astype(jnp.bfloat16)
        out = jax.block_until_ready(mlp_forward(x, params))
        assert out.shape == (batch, output_size), out.shape
        ref = mlp_reference(x, params)
        max_err = float(jnp.max(jnp.abs(out.astype(jnp.float32) - ref)))
        # bf16 output quantization near |tanh|~1 is ~4e-3; allow margin.
        assert max_err < 2e-2, (batch, max_err)

    print("KERNEL_OK")
</pallas_src>

<mosaic_0001>
module attributes {stable_mosaic.version = 11 : i64} {
  func.func @_mlp_kernel(%arg0: i32, %arg1: memref<128x16xbf16, #tpu.memory_space<vmem>>, %arg2: memref<32x16xbf16, #tpu.memory_space<vmem>>, %arg3: memref<32x1xf32, #tpu.memory_space<vmem>>, %arg4: memref<32x32xbf16, #tpu.memory_space<vmem>>, %arg5: memref<32x1xf32, #tpu.memory_space<vmem>>, %arg6: memref<32x8xbf16, #tpu.memory_space<vmem>>, %arg7: memref<1x8xf32, #tpu.memory_space<vmem>>, %arg8: memref<128x8xbf16, #tpu.memory_space<vmem>>) attributes {dimension_semantics = [#tpu.dimension_semantics<parallel>], iteration_bounds = array<i64: 4>, scalar_prefetch = 0 : i64, scratch_operands = 0 : i64, tpu.core_type = #tpu.core_type<tc>, window_params = [{transform_indices = @transform_0, window_bounds = array<i64: 128, 16>}, {pipeline_mode = #tpu.pipeline_mode<synchronous>, transform_indices = @transform_1, window_bounds = array<i64: 32, 16>}, {pipeline_mode = #tpu.pipeline_mode<synchronous>, transform_indices = @transform_2, window_bounds = array<i64: 32, 1>}, {pipeline_mode = #tpu.pipeline_mode<synchronous>, transform_indices = @transform_3, window_bounds = array<i64: 32, 32>}, {pipeline_mode = #tpu.pipeline_mode<synchronous>, transform_indices = @transform_4, window_bounds = array<i64: 32, 1>}, {pipeline_mode = #tpu.pipeline_mode<synchronous>, transform_indices = @transform_5, window_bounds = array<i64: 32, 8>}, {pipeline_mode = #tpu.pipeline_mode<synchronous>, transform_indices = @transform_6, window_bounds = array<i64: 1, 8>}, {transform_indices = @transform_7, window_bounds = array<i64: 128, 8>}]} {
    %c0 = arith.constant 0 : index
    %c0_0 = arith.constant 0 : index
    %0 = vector.load %arg2[%c0, %c0_0] : memref<32x16xbf16, #tpu.memory_space<vmem>>, vector<32x16xbf16>
    %c0_1 = arith.constant 0 : index
    %c0_2 = arith.constant 0 : index
    %1 = vector.load %arg1[%c0_1, %c0_2] : memref<128x16xbf16, #tpu.memory_space<vmem>>, vector<128x16xbf16>
    %cst = arith.constant dense<0.000000e+00> : vector<32x128xf32>
    %2 = tpu.matmul %0, %1, %cst {dimension_numbers = #tpu.dot_dimension_numbers<[1], [1], [0], [0], [0, 0, 1, 0], [], []>} : vector<32x16xbf16>, vector<128x16xbf16>, vector<32x128xf32> -> vector<32x128xf32>
    %c0_3 = arith.constant 0 : index
    %c0_4 = arith.constant 0 : index
    %3 = vector.load %arg3[%c0_3, %c0_4] : memref<32x1xf32, #tpu.memory_space<vmem>>, vector<32x1xf32>
    %4 = vector.broadcast %3 : vector<32x1xf32> to vector<32x128xf32>
    %5 = arith.addf %2, %4 : vector<32x128xf32>
    %cst_5 = arith.constant 0.000000e+00 : f32
    %6 = vector.broadcast %cst_5 : f32 to vector<32x128xf32>
    %7 = arith.maximumf %5, %6 : vector<32x128xf32>
    %8 = arith.truncf %7 : vector<32x128xf32> to vector<32x128xbf16>
    %c0_6 = arith.constant 0 : index
    %c0_7 = arith.constant 0 : index
    %9 = vector.load %arg4[%c0_6, %c0_7] : memref<32x32xbf16, #tpu.memory_space<vmem>>, vector<32x32xbf16>
    %cst_8 = arith.constant dense<0.000000e+00> : vector<32x128xf32>
    %10 = tpu.matmul %9, %8, %cst_8 {dimension_numbers = #tpu.dot_dimension_numbers<[1], [0], [0], [1], [0, 0, 1, 1], [], []>} : vector<32x32xbf16>, vector<32x128xbf16>, vector<32x128xf32> -> vector<32x128xf32>
    %c0_9 = arith.constant 0 : index
    %c0_10 = arith.constant 0 : index
    %11 = vector.load %arg5[%c0_9, %c0_10] : memref<32x1xf32, #tpu.memory_space<vmem>>, vector<32x1xf32>
    %12 = vector.broadcast %11 : vector<32x1xf32> to vector<32x128xf32>
    %13 = arith.addf %10, %12 : vector<32x128xf32>
    %cst_11 = arith.constant 0.000000e+00 : f32
    %14 = vector.broadcast %cst_11 : f32 to vector<32x128xf32>
    %15 = arith.maximumf %13, %14 : vector<32x128xf32>
    %16 = arith.truncf %15 : vector<32x128xf32> to vector<32x128xbf16>
    %c0_12 = arith.constant 0 : index
    %c0_13 = arith.constant 0 : index
    %17 = vector.load %arg6[%c0_12, %c0_13] : memref<32x8xbf16, #tpu.memory_space<vmem>>, vector<32x8xbf16>
    %cst_14 = arith.constant dense<0.000000e+00> : vector<128x8xf32>
    %18 = tpu.matmul %16, %17, %cst_14 {dimension_numbers = #tpu.dot_dimension_numbers<[0], [0], [1], [1], [0, 1, 1, 1], [], []>} : vector<32x128xbf16>, vector<32x8xbf16>, vector<128x8xf32> -> vector<128x8xf32>
    %c0_15 = arith.constant 0 : index
    %c0_16 = arith.constant 0 : index
    %19 = vector.load %arg7[%c0_15, %c0_16] : memref<1x8xf32, #tpu.memory_space<vmem>>, vector<1x8xf32>
    %20 = vector.broadcast %19 : vector<1x8xf32> to vector<128x8xf32>
    %21 = arith.addf %18, %20 : vector<128x8xf32>
    %22 = math.tanh %21 : vector<128x8xf32>
    %23 = arith.truncf %22 : vector<128x8xf32> to vector<128x8xbf16>
    %c0_17 = arith.constant 0 : index
    %c0_18 = arith.constant 0 : index
    %24 = vector.load %arg8[%c0_17, %c0_18] : memref<128x8xbf16, #tpu.memory_space<vmem>>, vector<128x8xbf16>
    tpu.vector_store %arg8[%c0_17, %c0_18], %23 {strides = array<i32>} : memref<128x8xbf16, #tpu.memory_space<vmem>>, vector<128x8xbf16>,
    return
  }
  func.func @transform_0(%arg0: i32) -> (i32, i32) {
    %c0_i32 = arith.constant 0 : i32
    %c0_i32_0 = arith.constant 0 : i32
    return %arg0, %c0_i32 : i32, i32
  }
  func.func @transform_1(%arg0: i32) -> (i32, i32) {
    %c0_i32 = arith.constant 0 : i32
    %c0_i32_0 = arith.constant 0 : i32
    %c0_i32_1 = arith.constant 0 : i32
    return %c0_i32, %c0_i32_0 : i32, i32
  }
  func.func @transform_2(%arg0: i32) -> (i32, i32) {
    %c0_i32 = arith.constant 0 : i32
    %c0_i32_0 = arith.constant 0 : i32
    %c0_i32_1 = arith.constant 0 : i32
    return %c0_i32, %c0_i32_0 : i32, i32
  }
  func.func @transform_3(%arg0: i32) -> (i32, i32) {
    %c0_i32 = arith.constant 0 : i32
    %c0_i32_0 = arith.constant 0 : i32
    %c0_i32_1 = arith.constant 0 : i32
    return %c0_i32, %c0_i32_0 : i32, i32
  }
  func.func @transform_4(%arg0: i32) -> (i32, i32) {
    %c0_i32 = arith.constant 0 : i32
    %c0_i32_0 = arith.constant 0 : i32
    %c0_i32_1 = arith.constant 0 : i32
    return %c0_i32, %c0_i32_0 : i32, i32
  }
  func.func @transform_5(%arg0: i32) -> (i32, i32) {
    %c0_i32 = arith.constant 0 : i32
    %c0_i32_0 = arith.constant 0 : i32
    %c0_i32_1 = arith.constant 0 : i32
    return %c0_i32, %c0_i32_0 : i32, i32
  }
  func.func @transform_6(%arg0: i32) -> (i32, i32) {
    %c0_i32 = arith.constant 0 : i32
    %c0_i32_0 = arith.constant 0 : i32
    %c0_i32_1 = arith.constant 0 : i32
    return %c0_i32, %c0_i32_0 : i32, i32
  }
  func.func @transform_7(%arg0: i32) -> (i32, i32) {
    %c0_i32 = arith.constant 0 : i32
    %c0_i32_0 = arith.constant 0 : i32
    return %arg0, %c0_i32 : i32, i32
  }
}

</mosaic_0001>

<bundles_post_ra>
// kernel: tpu_custom_call.1
= control target key start
LH: loop header
LB: loop body
LE: loop exit
PB: predicated region body
PF: predicated region fallthrough
CT: control target
= control target key end

     0   :  { %s1132_s24 = smov 0   ;;  %s1291_s0 = inlined_call_operand.vmem [shape: bf16[512,16], index: 0, kind: input, shape index: {}]   ;;  %s1292_s1 = inlined_call_operand.vmem [shape: bf16[32,16], index: 1, kind: input, shape index: {}]   ;;  %s1293_s2 = inlined_call_operand.vmem [shape: f32[32,1], index: 2, kind: input, shape index: {}]   ;;  %s1294_s3 = inlined_call_operand.vmem [shape: bf16[32,32], index: 3, kind: input, shape index: {}]   ;;  %s1295_s4 = inlined_call_operand.vmem [shape: f32[32,1], index: 4, kind: input, shape index: {}]   ;;  %s1296_s5 = inlined_call_operand.vmem [shape: bf16[32,8], index: 5, kind: input, shape index: {}]   ;;  %s1297_s6 = inlined_call_operand.vmem [shape: f32[1,8], index: 6, kind: input, shape index: {}]   ;;  %s1298_s7 = inlined_call_operand.vmem [shape: bf16[512,8], index: 7, kind: output, shape index: {}]  }
   0x1 LB: > { %s876_s25 = sadd.s32 4294967295, %s1089_s24   ;;  %p880_p0 = scmp.ge.s32.totalorder %s1089_s24, 1  ;;  %s1089_s24 = sphi %s1132_s24, %s17_s24  }
   0x2   : > { %p238_p1 = scmp.lt.s32.totalorder %s1089_s24, 5 }
   0x4   : > { %p239_p2 = pnand %p880_p0, %p238_p1 }
   0x5   : > { %s881_s26 = sshll.u32 (!%p239_p2), %s876_s25, 4  ;;  %v1045_v0 = vld [vmem:[%s1292_s1] sm:$0xff] (!%p239_p2)   ;;  %vm377_vm0 = vcmask (!%p239_p2), 130048   ;;  %v305_v2 = vld [vmem:[%s1293_s2 + $0x10] sm:$0xff] (!%p239_p2)  ;;  %v1091_v3 = vmov (!%p239_p2), 0   ;;  %v304_v4 = vld [vmem:[%s1293_s2 + $0x8] sm:$0xff] (!%p239_p2) }
   0x6   : > { %242 = sbr.rel (%p239_p2) target bundleno = 893 (0x37d), region = 48  ;;  %p271_p3 = scmp.lt.s32.totalorder (!%p239_p2), %s881_s26, 63  ;;  %v303_v1 = vld [vmem:[%s1293_s2] sm:$0xff] (!%p239_p2)  ;;  %986 = vmatprep.mubr.msk.bf16.mxu0 (!%p239_p2), %vm377_vm0, %v1045_v0  ;;  %1035 = vset.pattern.permute.xlu0 (!%p239_p2), %v1091_v3  ;;  %v306_v5 = vld [vmem:[%s1293_s2 + $0x18] sm:$0xff] (!%p239_p2)  ;;  %v468_v10 = vld [vmem:[%s1295_s4 + $0x8] sm:$0xff] (!%p239_p2)  ;;  %vm501_vm1 = vcmask (!%p239_p2), 261120  }
   0x7   : > { %309 = vperm.xlu0 (!%p239_p2), %1035, %v303_v1   ;;  %1036 = vset.pattern.permute.xlu1 (!%p239_p2), %v1091_v3  ;;  %v467_v9 = vld [vmem:[%s1295_s4] sm:$0xff] (!%p239_p2)  ;;  %v469_v11 = vld [vmem:[%s1295_s4 + $0x10] sm:$0xff] (!%p239_p2)  ;;  %v470_v12 = vld [vmem:[%s1295_s4 + $0x18] sm:$0xff] (!%p239_p2)  ;;  %vm803_vm2 = vcmask (!%p239_p2), 60416  }
   0x8   : > { %319 = vperm.xlu1 (!%p239_p2), %1036, %v305_v2   ;;  %v1046_v26 = vld [vmem:[%s1292_s1 + $0x8] sm:$0xff] (!%p239_p2)   ;;  %v1047_v27 = vld [vmem:[%s1294_s3] sm:$0xff] (!%p239_p2)  }
   0x9   : > { %994 = vmatprep.mubr.msk.bf16.mxu1 (!%p239_p2), %vm501_vm1, %v1047_v27  ;;  %v1048_v46 = vld [vmem:[%s1294_s3 + $0x8] sm:$0xff] (!%p239_p2)   ;;  %v1049_v47 = vld [vmem:[%s1296_s5] sm:$0xff] (!%p239_p2)  }
   0xa   : > { %v1050_v48 = vld [vmem:[%s1296_s5 + $0x8] sm:$0xff] (!%p239_p2)  }
   0xb   : > { %314 = vperm.xlu0 (!%p239_p2), %1035, %v304_v4  }
   0xc   : > { %324 = vperm.xlu1 (!%p239_p2), %1036, %v306_v5  }
   0xd   : > { %s1300_s26 = smov (!%p271_p3, %s881_s26), 63 }
   0xe   : > { %s882_s12 = sshll.u32 %s1300_s26, 2 }
   0xf   : > { %s1164_s17 = scalar_lea.vmem %s1291_s0, %s882_s12  ;;  %473 = vperm.xlu0 %1035, %v467_v9   ;;  %s1246_s20 = scalar_lea.vmem %s1298_s7, %s882_s12 }
  0x10   : > { %v1037_v6 = vld [vmem:[%s1164_s17] sm:$0xff]   ;;  %v1038_v7 = vld [vmem:[%s1164_s17 + $0x8] sm:$0xff]   ;;  %478 = vperm.xlu1 %1036, %v468_v10   ;;  %v1039_v14 = vld [vmem:[%s1164_s17 + $0x10] sm:$0xff]  }
  0x11   : > { %1018 = vmatprep.subr.msk.bf16.mxu0 %vm377_vm0, %v1037_v6  ;;  %v385_v8 = vsel %vm377_vm0, %v1037_v6, 0  ;;  %v388_v13 = vsel %vm377_vm0, %v1038_v7, 0  ;;  %v391_v15 = vsel %vm377_vm0, %v1039_v14, 0  ;;  %v1040_v16 = vld [vmem:[%s1164_s17 + $0x18] sm:$0xff]   ;;  %v1041_v18 = vld [vmem:[%s1164_s17 + $0x20] sm:$0xff]   ;;  %v1042_v20 = vld [vmem:[%s1164_s17 + $0x28] sm:$0xff]  }
  0x12   : > { %971 = vmatpush3.bf16.xpose.msra.mxu0 %v385_v8  ;;  %v394_v17 = vsel %vm377_vm0, %v1040_v16, 0  ;;  %v397_v19 = vsel %vm377_vm0, %v1041_v18, 0  ;;  %v400_v21 = vsel %vm377_vm0, %v1042_v20, 0  ;;  %v1043_v22 = vld [vmem:[%s1164_s17 + $0x30] sm:$0xff]   ;;  %v1044_v24 = vld [vmem:[%s1164_s17 + $0x38] sm:$0xff]  }
  0x13   : > { %1019 = vmatprep.subr.msk.bf16.mxu0 %vm377_vm0, %v1038_v7  ;;  %483 = vperm.xlu0 %1035, %v469_v11   ;;  %v403_v23 = vsel %vm377_vm0, %v1043_v22, 0  ;;  %v406_v25 = vsel %vm377_vm0, %v1044_v24, 0  ;;  %v1231_v11 = vld [vmem:[%s1297_s6] ss:$0 sm:$0xff] }
  0x14   : > { %488 = vperm.xlu1 %1036, %v470_v12  }
  0x1a   : > { %973 = vmatpush3.bf16.xpose.msra.mxu0 %v388_v13 }
  0x1b   : > { %1020 = vmatprep.subr.msk.bf16.mxu0 %vm377_vm0, %v1039_v14 }
  0x22   : > { %975 = vmatpush3.bf16.xpose.msra.mxu0 %v391_v15 }
  0x23   : > { %1021 = vmatprep.subr.msk.bf16.mxu0 %vm377_vm0, %v1040_v16 }
  0x2a   : > { %977 = vmatpush3.bf16.xpose.msra.mxu0 %v394_v17 }
  0x2b   : > { %1022 = vmatprep.subr.msk.bf16.mxu0 %vm377_vm0, %v1041_v18 }
  0x32   : > { %979 = vmatpush3.bf16.xpose.msra.mxu0 %v397_v19 }
  0x33   : > { %1023 = vmatprep.subr.msk.bf16.mxu0 %vm377_vm0, %v1042_v20 }
  0x3a   : > { %981 = vmatpush3.bf16.xpose.msra.mxu0 %v400_v21 }
  0x3b   : > { %1024 = vmatprep.subr.msk.bf16.mxu0 %vm377_vm0, %v1043_v22 }
  0x42   : > { %983 = vmatpush3.bf16.xpose.msra.mxu0 %v403_v23 }
  0x43   : > { %1025 = vmatprep.subr.msk.bf16.mxu0 %vm377_vm0, %v1044_v24 }
  0x4a   : > { %985 = vmatpush3.bf16.xpose.msra.mxu0 %v406_v25 }
  0x51   : > { %987 = vmatmul.mubr.msk.bf16.vlgmr.msra.gmra.mrb[0].mxu0 %vm377_vm0, %v1046_v26 }
  0x86   : > { %v310_v29 = vpop.permute.xlu0 %309 }
  0x87   : > { %v320_v28 = vpop.permute.xlu1 %319 }
  0x8a   : > { %v315_v36 = vpop.permute.xlu0 %314 }
  0x8b   : > { %v325_v33 = vpop.permute.xlu1 %324 }
  0x8e   : > { %v474_v49 = vpop.permute.xlu0 %473 }
  0x8f   : > { %v479_v50 = vpop.permute.xlu1 %478 }
  0x92   : > { %v484_v51 = vpop.permute.xlu0 %483 }
  0x93   : > { %v489_v55 = vpop.permute.xlu1 %488 }
 0x124   : > { %v988_v30 = vpop.f32.mrb[0].mxu0 }
 0x125   : > { %v451_v31 = vadd.f32 %v988_v30, %v320_v28  ;;  %v442_v32 = vpop.f32.mrb[1].mxu0 }
 0x126   : > { %v443_v34 = vadd.f32 %v442_v32, %v310_v29  ;;  %v989_v35 = vpop.f32.mrb[2].mxu0 }
 0x127   : > { %v454_v37 = vadd.f32 %v989_v35, %v325_v33  ;;  %v445_v38 = vpop.f32.mrb[3].mxu0  ;;  %v459_v40 = vmax.f32 %v451_v31, 0.0 }
 0x128   : > { %v446_v39 = vadd.f32 %v445_v38, %v315_v36  ;;  %v457_v42 = vmax.f32 %v443_v34, 0.0 }
 0x129   : > { %v460_v41 = vmax.f32 %v454_v37, 0.0 }
 0x12a   : > { %v458_v43 = vmax.f32 %v446_v39, 0.0 }
 0x12b   : > { %v462_v44 = vpack.c.bf16 %v460_v41, %v459_v40 }
 0x12c   : > { %v461_v45 = vpack.c.bf16 %v458_v43, %v457_v42 }
 0x12e   : > { %990 = vmatprep.subr.bf16.mxu1 %v461_v45 }
 0x12f   : > { %991 = vmatpush3.bf16.msra.mxu1 %v461_v45 }
 0x130   : > { %992 = vmatprep.subr.bf16.mxu1 %v462_v44 }
 0x133   : > { %993 = vmatpush3.bf16.msra.mxu1 %v462_v44 }
 0x134   : > { %998 = vmatprep.subr.bf16.mxu1 %v1049_v47 }
 0x136   : > { %995 = vmatmul.mubr.msk.bf16.vlgmr.msra.gmra.mrb[0].mxu1 %vm501_vm1, %v1048_v46 }
 0x137   : > { %999 = vmatpush3.bf16.msra.mxu1 %v1049_v47 }
 0x138   : > { %1000 = vmatprep.subr.bf16.mxu1 %v1050_v48 }
 0x13b   : > { %1001 = vmatpush3.bf16.msra.mxu1 %v1050_v48 }
 0x209   : > { %v996_v52 = vpop.f32.mrb[0].mxu1 }
 0x20a   : > { %v551_v53 = vadd.f32 %v996_v52, %v484_v51  ;;  %v542_v54 = vpop.f32.mrb[1].mxu1 }
 0x20b   : > { %v543_v56 = vadd.f32 %v542_v54, %v474_v49  ;;  %v997_v57 = vpop.f32.mrb[2].mxu1 }
 0x20c   : > { %v554_v58 = vadd.f32 %v997_v57, %v489_v55  ;;  %v545_v59 = vpop.f32.mrb[3].mxu1  ;;  %v559_v61 = vmax.f32 %v551_v53, 0.0 }
 0x20d   : > { %v546_v60 = vadd.f32 %v545_v59, %v479_v50  ;;  %v557_v63 = vmax.f32 %v543_v56, 0.0 }
 0x20e   : > { %v560_v62 = vmax.f32 %v554_v58, 0.0 }
 0x20f   : > { %v558_v0 = vmax.f32 %v546_v60, 0.0 }
 0x210   : > { %v562_v1 = vpack.c.bf16 %v560_v62, %v559_v61 }
 0x211   : > { %v561_v2 = vpack.c.bf16 %v558_v0, %v557_v63 }
 0x213   : > { %574 = vxpose.xlu0.c.b16.start [1/2] (short) %v561_v2, 128 }
 0x217   : > { %575 = vxpose.xlu0.c.b16.end [2/2] (short) %v562_v1, 128 }
 0x279   : > { %v582_v3 = vpop.trf.xlu0 }
 0x27a   : > { %1002 = vmatprep.mubr.msk.bf16.mxu1 %vm501_vm1, %v582_v3 }
 0x27d   : > { %v583_v4 = vpop.trf.xlu0 }
 0x27e   : > { %1003 = vmatmul.mubr.msk.bf16.vlgmr.msra.gmra.mrb[4].mxu1 %vm501_vm1, %v583_v4 }
 0x281   : > { %v584_v5 = vpop.trf.xlu0 }
 0x282   : > { %1006 = vmatprep.mubr.msk.bf16.mxu1 %vm501_vm1, %v584_v5 }
 0x285   : > { %v585_v6 = vpop.trf.xlu0 }
 0x286   : > { %1007 = vmatmul.mubr.msk.bf16.gmra.mrb[8].mxu1 %vm501_vm1, %v585_v6 }
 0x289   : > { %v586_v7 = vpop.trf.xlu0 }
 0x28a   : > { %1010 = vmatprep.mubr.msk.bf16.mxu1 %vm501_vm1, %v586_v7 }
 0x28d   : > { %v587_v8 = vpop.trf.xlu0 }
 0x28e   : > { %1011 = vmatmul.mubr.msk.bf16.gmra.mrb[12].mxu1 %vm501_vm1, %v587_v8 }
 0x291   : > { %v588_v9 = vpop.trf.xlu0 }
 0x292   : > { %1014 = vmatprep.mubr.msk.bf16.mxu1 %vm501_vm1, %v588_v9 }
 0x295   : > { %v589_v10 = vpop.trf.xlu0 }
 0x296   : > { %1015 = vmatmul.mubr.msk.bf16.gmra.mrb[16].mxu1 %vm501_vm1, %v589_v10 }
 0x351   : > { %v1004_v12 = vpop.f32.mrb[4].mxu1 }
 0x352   : > { %v669_v13 = vadd.f32 %v1004_v12, %v1231_v11  ;;  %v660_v14 = vpop.f32.mrb[5].mxu1 }
 0x353   : > { %v661_v15 = vadd.f32 %v1231_v11, %v660_v14  ;;  %v1005_v16 = vpop.f32.mrb[6].mxu1 }
 0x354   : > { %1051 = vtanh.f32 %v669_v13  ;;  %v672_v17 = vadd.f32 %v1005_v16, %v1231_v11  ;;  %v663_v18 = vpop.f32.mrb[7].mxu1 }
 0x355   : > { %1053 = vtanh.f32 %v661_v15  ;;  %v664_v19 = vadd.f32 %v1231_v11, %v663_v18 }
 0x356   : > { %1055 = vtanh.f32 %v672_v17 }
 0x357   : > { %1057 = vtanh.f32 %v664_v19 }
 0x359   : > { %v1008_v20 = vpop.f32.mrb[8].mxu1 }
 0x35a   : > { %v685_v21 = vadd.f32 %v1008_v20, %v1231_v11  ;;  %v676_v22 = vpop.f32.mrb[9].mxu1 }
 0x35b   : > { %v677_v23 = vadd.f32 %v1231_v11, %v676_v22  ;;  %v1009_v24 = vpop.f32.mrb[10].mxu1 }
 0x35c   : > { %1059 = vtanh.f32 %v685_v21  ;;  %v688_v25 = vadd.f32 %v1009_v24, %v1231_v11  ;;  %v679_v26 = vpop.f32.mrb[11].mxu1 }
 0x35d   : > { %1061 = vtanh.f32 %v677_v23  ;;  %v680_v27 = vadd.f32 %v1231_v11, %v679_v26 }
 0x35e   : > { %v1052_v28 = vpop.eup %1051  ;;  %1063 = vtanh.f32 %v688_v25 }
 0x35f   : > { %v1054_v29 = vpop.eup %1053  ;;  %v932_v30 = vpack.c.bf16 %v1052_v28, %v1052_v28  ;;  %1065 = vtanh.f32 %v680_v27 }
 0x360   : > { %v1056_v31 = vpop.eup %1055  ;;  %v930_v32 = vpack.c.bf16 %v1054_v29, %v1054_v29 }
 0x361   : > { %v1058_v33 = vpop.eup %1057  ;;  %806 = vst.msk [vmem:[%s1246_s20 + $0x8] sm:$0xf] %vm803_vm2, %v932_v30  ;;  %v933_v34 = vpack.c.bf16 %v1056_v31, %v1056_v31  ;;  %v1012_v35 = vpop.f32.mrb[12].mxu1 }
 0x362   : > { %804 = vst.msk [vmem:[%s1246_s20] sm:$0xf] %vm803_vm2, %v930_v32  ;;  %v931_v36 = vpack.c.bf16 %v1058_v33, %v1058_v33  ;;  %v701_v37 = vadd.f32 %v1012_v35, %v1231_v11  ;;  %v692_v38 = vpop.f32.mrb[13].mxu1 }
 0x363   : > { %807 = vst.msk [vmem:[%s1246_s20 + $0xc] sm:$0xf] %vm803_vm2, %v933_v34  ;;  %v693_v39 = vadd.f32 %v1231_v11, %v692_v38  ;;  %v1013_v40 = vpop.f32.mrb[14].mxu1 }
 0x364   : > { %805 = vst.msk [vmem:[%s1246_s20 + $0x4] sm:$0xf] %vm803_vm2, %v931_v36  ;;  %1067 = vtanh.f32 %v701_v37  ;;  %v704_v41 = vadd.f32 %v1013_v40, %v1231_v11  ;;  %v695_v42 = vpop.f32.mrb[15].mxu1 }
 0x365   : > { %1069 = vtanh.f32 %v693_v39  ;;  %v696_v43 = vadd.f32 %v1231_v11, %v695_v42 }
 0x366   : > { %v1060_v44 = vpop.eup %1059  ;;  %1071 = vtanh.f32 %v704_v41 }
 0x367   : > { %v1062_v45 = vpop.eup %1061  ;;  %v936_v46 = vpack.c.bf16 %v1060_v44, %v1060_v44  ;;  %1073 = vtanh.f32 %v696_v43 }
 0x368   : > { %v1064_v47 = vpop.eup %1063  ;;  %v934_v48 = vpack.c.bf16 %v1062_v45, %v1062_v45 }
 0x369   : > { %v1066_v49 = vpop.eup %1065  ;;  %810 = vst.msk [vmem:[%s1246_s20 + $0x18] sm:$0xf] %vm803_vm2, %v936_v46  ;;  %v937_v50 = vpack.c.bf16 %v1064_v47, %v1064_v47  ;;  %v1016_v51 = vpop.f32.mrb[16].mxu1 }
 0x36a   : > { %808 = vst.msk [vmem:[%s1246_s20 + $0x10] sm:$0xf] %vm803_vm2, %v934_v48  ;;  %v935_v52 = vpack.c.bf16 %v1066_v49, %v1066_v49  ;;  %v717_v53 = vadd.f32 %v1016_v51, %v1231_v11  ;;  %v708_v54 = vpop.f32.mrb[17].mxu1 }
 0x36b   : > { %811 = vst.msk [vmem:[%s1246_s20 + $0x1c] sm:$0xf] %vm803_vm2, %v937_v50  ;;  %v709_v55 = vadd.f32 %v1231_v11, %v708_v54  ;;  %v1017_v56 = vpop.f32.mrb[18].mxu1 }
 0x36c   : > { %809 = vst.msk [vmem:[%s1246_s20 + $0x14] sm:$0xf] %vm803_vm2, %v935_v52  ;;  %1075 = vtanh.f32 %v717_v53  ;;  %v720_v57 = vadd.f32 %v1017_v56, %v1231_v11  ;;  %v711_v58 = vpop.f32.mrb[19].mxu1 }
 0x36d   : > { %1077 = vtanh.f32 %v709_v55  ;;  %v712_v59 = vadd.f32 %v1231_v11, %v711_v58 }
 0x36e   : > { %v1068_v60 = vpop.eup %1067  ;;  %1079 = vtanh.f32 %v720_v57 }
 0x36f   : > { %v1070_v61 = vpop.eup %1069  ;;  %v940_v62 = vpack.c.bf16 %v1068_v60, %v1068_v60  ;;  %1081 = vtanh.f32 %v712_v59 }
 0x370   : > { %v1072_v63 = vpop.eup %1071  ;;  %v938_v0 = vpack.c.bf16 %v1070_v61, %v1070_v61 }
 0x371   : > { %v1074_v1 = vpop.eup %1073  ;;  %814 = vst.msk [vmem:[%s1246_s20 + $0x28] sm:$0xf] %vm803_vm2, %v940_v62  ;;  %v941_v2 = vpack.c.bf16 %v1072_v63, %v1072_v63 }
 0x372   : > { %812 = vst.msk [vmem:[%s1246_s20 + $0x20] sm:$0xf] %vm803_vm2, %v938_v0  ;;  %v939_v3 = vpack.c.bf16 %v1074_v1, %v1074_v1 }
 0x373   : > { %815 = vst.msk [vmem:[%s1246_s20 + $0x2c] sm:$0xf] %vm803_vm2, %v941_v2 }
 0x374   : > { %813 = vst.msk [vmem:[%s1246_s20 + $0x24] sm:$0xf] %vm803_vm2, %v939_v3 }
 0x376   : > { %v1076_v4 = vpop.eup %1075 }
 0x377   : > { %v1078_v5 = vpop.eup %1077  ;;  %v944_v6 = vpack.c.bf16 %v1076_v4, %v1076_v4 }
 0x378   : > { %v1080_v7 = vpop.eup %1079  ;;  %v942_v8 = vpack.c.bf16 %v1078_v5, %v1078_v5 }
 0x379   : > { %v1082_v9 = vpop.eup %1081  ;;  %818 = vst.msk [vmem:[%s1246_s20 + $0x38] sm:$0xf] %vm803_vm2, %v944_v6  ;;  %v945_v10 = vpack.c.bf16 %v1080_v7, %v1080_v7 }
 0x37a   : > { %816 = vst.msk [vmem:[%s1246_s20 + $0x30] sm:$0xf] %vm803_vm2, %v942_v8  ;;  %v943_v11 = vpack.c.bf16 %v1082_v9, %v1082_v9 }
 0x37b   : > { %819 = vst.msk [vmem:[%s1246_s20 + $0x3c] sm:$0xf] %vm803_vm2, %v945_v10 }
 0x37c   : > { %817 = vst.msk [vmem:[%s1246_s20 + $0x34] sm:$0xf] %vm803_vm2, %v943_v11 }
 0x37d PF: > { %s17_s24 = sadd.s32 1, %s1089_s24  }
 0x37e   : > { %p14_p4 = scmp.ge.s32.totalorder %s17_s24, 6  }
 0x380   :  { %16 = sbr.rel (!%p14_p4) target bundleno = 1 (0x1), region = 78 }

</bundles_post_ra>
